<compile_context>
chip_gen: v5e
topology: v5e:2x2
jax: 0.10.0
libtpu: 0.0.40
codegen_flags: <defaults>
</compile_context>

<pallas_src>
import functools

import numpy as np
import jax
import jax.numpy as jnp
from jax import lax
from jax.experimental import pallas as pl
from jax.experimental.pallas import tpu as pltpu

MXU_DT = jnp.bfloat16   # matmul operand dtype (f32 accumulation on the MXU)
ACT_DT = jnp.bfloat16   # inter-kernel activation dtype (halves HBM traffic)


def _lane_tile(hw, cap=1024):
    """Lane tile (multiple of 128 unless full-extent).  Prefer >=2 lane steps so a
    second TensorCore (v7x) gets work even at B=1; cap bounds the VMEM block."""
    if hw % 128 == 0 and hw >= 256:
        return min(cap, (hw // 2 // 128) * 128)
    return min(hw, cap)


def _vmem_limit(block_bytes):
    """Scoped-VMEM request derived from actual block sizes (double-buffered blocks
    + in-kernel temporaries), kept below v7x's 64 MiB physical VMEM."""
    return int(min(48 * 2**20, max(16 * 2**20, 4 * block_bytes)))


def _silu(y):
    # y * sigmoid(y); exp and the approximate reciprocal both ride the EUP slot,
    # keeping the VALU free in these small-channel, memory-bound kernels.
    return y * pl.reciprocal(1.0 + jnp.exp(-y), approx=True)


def _roll_lanes(v, off, hw):
    """y[:, p] = v[:, (p + off) % hw] (cyclic lane shift; boundaries masked by caller)."""
    s = (-off) % hw
    if s == 0:
        return v
    if hw % 128 == 0:
        return pltpu.roll(v, shift=s, axis=1)          # XLU rotate, no VMEM copy
    return jnp.concatenate([v[:, hw - s:], v[:, :hw - s]], axis=1)


# ------------------------------ Pallas kernels ------------------------------ #

def _cv12_kernel(x_ref, w1_ref, b1_ref, w2_ref, b2_ref, y1_ref, y2_ref):
    # Fused cv1 + cv2 (shared input), BN folded into the bf16 weights.
    x = x_ref[0].astype(MXU_DT)                                     # (c1, T)
    h1 = jnp.dot(w1_ref[...], x, preferred_element_type=jnp.float32) + b1_ref[...]
    y1_ref[0] = _silu(h1).astype(y1_ref.dtype)
    h2 = jnp.dot(w2_ref[...], x, preferred_element_type=jnp.float32) + b2_ref[...]
    y2_ref[0] = _silu(h2).astype(y2_ref.dtype)


def cv12(x, w1T, b1, w2T, b2):
    """cv1 and cv2 (1x1 conv + folded BN + SiLU) sharing one read of x.
    Returns (y1, y2) as separate arrays so downstream never over-fetches channels."""
    B, c1, HW = x.shape
    c_ = w1T.shape[0]
    tl = _lane_tile(HW)
    blk_bytes = tl * (c1 * x.dtype.itemsize + 2 * c_ * jnp.dtype(ACT_DT).itemsize)
    return pl.pallas_call(
        _cv12_kernel,
        out_shape=(jax.ShapeDtypeStruct((B, c_, HW), ACT_DT),
                   jax.ShapeDtypeStruct((B, c_, HW), ACT_DT)),
        grid=(B, pl.cdiv(HW, tl)),
        in_specs=[
            pl.BlockSpec((1, c1, tl), lambda bb, i: (bb, 0, i)),
            pl.BlockSpec((c_, c1), lambda bb, i: (0, 0)),
            pl.BlockSpec((c_, 1), lambda bb, i: (0, 0)),
            pl.BlockSpec((c_, c1), lambda bb, i: (0, 0)),
            pl.BlockSpec((c_, 1), lambda bb, i: (0, 0)),
        ],
        out_specs=(pl.BlockSpec((1, c_, tl), lambda bb, i: (bb, 0, i)),
                   pl.BlockSpec((1, c_, tl), lambda bb, i: (bb, 0, i))),
        compiler_params=pltpu.CompilerParams(
            dimension_semantics=("parallel", "parallel"),
            vmem_limit_bytes=_vmem_limit(blk_bytes)),
    )(x, w1T, b1, w2T, b2)


def _block_kernel(x_ref, wt_ref, w2a_ref, w2b_ref, b2_ref, w3_ref, b3_ref, o_ref,
                  *, dc, c_, H, W, shortcut):
    # Fully fused FasterNetBlock:
    #   PConv(3x3 grouped, 'same') -> split_cat -> cv2+SiLU -> cv3+SiLU -> residual.
    # Everything between the carrier load and the carrier store stays in VMEM/vregs.
    HW = H * W
    x = x_ref[0]                                                    # (c_, HW) bf16
    xa = x[:dc, :].astype(jnp.float32)                              # conv'd channels
    pos = lax.broadcasted_iota(jnp.int32, (1, HW), 1)
    row, col = pos // W, pos % W

    # 3x3 grouped conv as 9 accumulating per-tap block-diagonal dense dots.
    acc = jnp.zeros((dc, HW), jnp.float32)
    t = 0
    for dy in (-1, 0, 1):
        for dx in (-1, 0, 1):
            shifted = _roll_lanes(xa, dy * W + dx, HW)
            valid = ((row + dy >= 0) & (row + dy < H) &
                     (col + dx >= 0) & (col + dx < W))              # zero 'same' pad
            tap = jnp.where(valid, shifted, 0.0).astype(MXU_DT)     # one tap at a time
            acc = acc + jnp.dot(wt_ref[t], tap,
                                preferred_element_type=jnp.float32)
            t += 1
    t1 = acc.astype(MXU_DT)                                         # (dc, HW)

    # split_cat + cv2 as two accumulating dots (no concatenated VMEM buffer).
    h = (jnp.dot(w2a_ref[...], t1, preferred_element_type=jnp.float32)
         + jnp.dot(w2b_ref[...], x[dc:, :].astype(MXU_DT),
                   preferred_element_type=jnp.float32)
         + b2_ref[...])
    h = _silu(h)
    u = jnp.dot(w3_ref[...], h.astype(MXU_DT),
                preferred_element_type=jnp.float32) + b3_ref[...]
    u = _silu(u)
    if shortcut:
        u = u + x.astype(jnp.float32)                               # residual in f32
    o_ref[0] = u.astype(o_ref.dtype)


def faster_block(carrier, wtap, w2a, w2b, b2, w3, b3, *, dc, c_, H, W, shortcut):
    B, _, HW = carrier.shape
    kern = functools.partial(_block_kernel, dc=dc, c_=c_, H=H, W=W, shortcut=shortcut)
    blk_bytes = HW * (2 * c_ * 2 + (2 * dc + 3 * c_) * 4)
    # TODO(synk): for very large H*W planes, tile over H with a 1-row halo DMA (and
    # add a parallel axis) instead of one full-plane block per batch element.
    return pl.pallas_call(
        kern,
        out_shape=jax.ShapeDtypeStruct((B, c_, HW), ACT_DT),
        grid=(B,),
        in_specs=[
            pl.BlockSpec((1, c_, HW), lambda bb: (bb, 0, 0)),
            pl.BlockSpec((9, dc, dc), lambda bb: (0, 0, 0)),
            pl.BlockSpec((c_, dc), lambda bb: (0, 0)),
            pl.BlockSpec((c_, c_ - dc), lambda bb: (0, 0)),
            pl.BlockSpec((c_, 1), lambda bb: (0, 0)),
            pl.BlockSpec((c_, c_), lambda bb: (0, 0)),
            pl.BlockSpec((c_, 1), lambda bb: (0, 0)),
        ],
        out_specs=pl.BlockSpec((1, c_, HW), lambda bb: (bb, 0, 0)),
        compiler_params=pltpu.CompilerParams(
            dimension_semantics=("parallel",),
            vmem_limit_bytes=_vmem_limit(blk_bytes)),
    )(carrier, wtap, w2a, w2b, b2, w3, b3)


def _final_kernel(t_ref, y2_ref, wa_ref, wb_ref, b_ref, o_ref):
    # cv3(cat([t, y2])) as two accumulating dots on the pre-split weight.
    y = (jnp.dot(wa_ref[...], t_ref[0].astype(MXU_DT),
                 preferred_element_type=jnp.float32)
         + jnp.dot(wb_ref[...], y2_ref[0].astype(MXU_DT),
                   preferred_element_type=jnp.float32)
         + b_ref[...])
    o_ref[0] = _silu(y).astype(o_ref.dtype)


def final_conv(t, y2, wa, wb, b):
    B, c_, HW = t.shape
    c2 = wa.shape[0]
    tl = _lane_tile(HW)
    blk_bytes = tl * (2 * c_ * 2 + c2 * 4)
    return pl.pallas_call(
        _final_kernel,
        out_shape=jax.ShapeDtypeStruct((B, c2, HW), jnp.float32),
        grid=(B, pl.cdiv(HW, tl)),
        in_specs=[
            pl.BlockSpec((1, c_, tl), lambda bb, i: (bb, 0, i)),
            pl.BlockSpec((1, c_, tl), lambda bb, i: (bb, 0, i)),
            pl.BlockSpec((c2, c_), lambda bb, i: (0, 0)),
            pl.BlockSpec((c2, c_), lambda bb, i: (0, 0)),
            pl.BlockSpec((c2, 1), lambda bb, i: (0, 0)),
        ],
        out_specs=pl.BlockSpec((1, c2, tl), lambda bb, i: (bb, 0, i)),
        compiler_params=pltpu.CompilerParams(
            dimension_semantics=("parallel", "parallel"),
            vmem_limit_bytes=_vmem_limit(blk_bytes)),
    )(t, y2, wa, wb, b)


# ------------------------- parameter init / weight prep --------------------- #

def init_conv_bn(key, cin, cout, eps=1e-5):
    kw, kg, kb, km, kv = jax.random.split(key, 5)
    w = jax.random.normal(kw, (cin, cout), jnp.float32) * 0.1      # 1x1 conv weight
    gamma = jax.random.uniform(kg, (cout,), jnp.float32, 0.5, 1.5)
    beta = jax.random.normal(kb, (cout,), jnp.float32) * 0.1
    mean = jax.random.normal(km, (cout,), jnp.float32) * 0.1
    var = jax.random.uniform(kv, (cout,), jnp.float32, 0.5, 1.5)
    scale = gamma / jnp.sqrt(var + eps)                            # eval-mode BN fold
    bias = beta - mean * scale
    return {"w": w, "scale": scale, "bias": bias}


def init_fasternext(key, c1, c2, n=1, e=0.5):
    c_ = int(c2 * e)
    keys = jax.random.split(key, 3 + n)
    raw = {"c_": c_, "c2": c2,
           "cv1": init_conv_bn(keys[0], c1, c_),
           "cv2": init_conv_bn(keys[1], c1, c_),
           "cv3": init_conv_bn(keys[2], 2 * c_, c2),
           "m": []}
    for i in range(n):
        bk = jax.random.split(keys[3 + i], 3)
        dc = c_ // 2                                               # PConv(c_, n_div=2)
        g1 = int(c_ / 4)                                           # g=True branch
        cpg = dc // g1
        w_pt = jax.random.normal(bk[0], (dc, cpg, 3, 3), jnp.float32) * 0.1
        raw["m"].append({"dim_conv": dc, "g1": g1, "w_pt": w_pt,
                         "cv2": init_conv_bn(bk[1], c_, c_),       # e=1.0 inside block
                         "cv3": init_conv_bn(bk[2], c_, c_)})
    return raw


def _fold(p):
    """BN scale folded into the weight; (Cout, Cin) bf16 weight + (Cout,1) f32 bias."""
    wT = (p["w"] * p["scale"][None, :]).T.astype(MXU_DT)
    return wT, p["bias"].reshape(-1, 1).astype(jnp.float32)


def _pconv_tap_dense(w_pt, dc, g1):
    """(dc, dc/g1, 3, 3) grouped weight -> (9, dc, dc) per-tap block-diagonal dense."""
    cpg = dc // g1
    w_np = np.asarray(w_pt)
    dense = np.zeros((9, dc, dc), np.float32)
    for o in range(dc):
        g = o // cpg
        for j in range(cpg):
            i = g * cpg + j
            for ky in range(3):
                for kx in range(3):
                    dense[ky * 3 + kx, o, i] = w_np[o, j, ky, kx]
    return jnp.asarray(dense).astype(MXU_DT)


def prepare_kernel_params(raw):
    c_ = raw["c_"]
    w1T, b1 = _fold(raw["cv1"])
    w2T, b2 = _fold(raw["cv2"])
    w3T, b3 = _fold(raw["cv3"])
    prep = {"c_": c_, "c2": raw["c2"],
            "cv1_wT": w1T, "cv1_b": b1,
            "cv2_wT": w2T, "cv2_b": b2,
            "cv3_wa": w3T[:, :c_], "cv3_wb": w3T[:, c_:], "cv3_b": b3,
            "m": []}
    for blk in raw["m"]:
        dc, g1 = blk["dim_conv"], blk["g1"]
        bw2T, bb2 = _fold(blk["cv2"])
        bw3T, bb3 = _fold(blk["cv3"])
        prep["m"].append({"dim_conv": dc,
                          "pconv_w": _pconv_tap_dense(blk["w_pt"], dc, g1),
                          "cv2_wa": bw2T[:, :dc], "cv2_wb": bw2T[:, dc:], "cv2_b": bb2,
                          "cv3_wT": bw3T, "cv3_b": bb3})
    return prep


# --------------------------------- forward ---------------------------------- #

def fasternext_forward(x_nchw, kp, shortcut=True):
    B, c1, H, W = x_nchw.shape
    HW = H * W
    c_ = kp["c_"]
    x = x_nchw.astype(jnp.float32).reshape(B, c1, HW)              # NC(HW), free reshape

    y1, y2 = cv12(x, kp["cv1_wT"], kp["cv1_b"], kp["cv2_wT"], kp["cv2_b"])

    t = y1
    for blk in kp["m"]:
        t = faster_block(t, blk["pconv_w"], blk["cv2_wa"], blk["cv2_wb"], blk["cv2_b"],
                         blk["cv3_wT"], blk["cv3_b"],
                         dc=blk["dim_conv"], c_=c_, H=H, W=W, shortcut=shortcut)

    out = final_conv(t, y2, kp["cv3_wa"], kp["cv3_wb"], kp["cv3_b"])
    return out.reshape(B, kp["c2"], H, W)                          # NCHW


def ref_forward(x_nchw, raw, shortcut=True):
    """Pure-JAX reference (XLA conv/einsum) with the same bf16 operand casts."""
    x = jnp.transpose(x_nchw, (0, 2, 3, 1)).astype(jnp.float32)    # NHWC

    def pw(t, p):
        wT = (p["w"] * p["scale"][None, :]).astype(MXU_DT)
        y = jnp.einsum("bhwc,cd->bhwd", t.astype(MXU_DT), wT,
                       preferred_element_type=jnp.float32) + p["bias"]
        return y * jax.nn.sigmoid(y)

    def gconv(t, blk):                                             # (B, H, W, dc)
        w_hwio = jnp.transpose(blk["w_pt"], (2, 3, 1, 0)).astype(MXU_DT)
        return lax.conv_general_dilated(
            t.astype(MXU_DT), w_hwio, (1, 1), "SAME",
            dimension_numbers=("NHWC", "HWIO", "NHWC"),
            feature_group_count=blk["g1"],
            preferred_element_type=jnp.float32)

    y1, y2 = pw(x, raw["cv1"]), pw(x, raw["cv2"])
    t = y1
    for blk in raw["m"]:
        dc = blk["dim_conv"]
        tc = jnp.concatenate([gconv(t[..., :dc], blk), t[..., dc:]], axis=-1)
        u = pw(pw(tc, blk["cv2"]), blk["cv3"])
        t = t + u if shortcut else u
    out = pw(jnp.concatenate([t, y2], axis=-1), raw["cv3"])
    return jnp.transpose(out, (0, 3, 1, 2))


# ----------------------------------- main ----------------------------------- #

if __name__ == "__main__":
    key = jax.random.PRNGKey(0)
    kx, kparam = jax.random.split(key)

    B, c1, c2, H, W = 2, 8, 16, 16, 16        # c_ = 8, dim_conv = 4, g1 = 2
    x = jax.random.normal(kx, (B, c1, H, W), jnp.float32)          # NCHW like PyTorch
    raw = init_fasternext(kparam, c1, c2, n=1, e=0.5)
    kparams = prepare_kernel_params(raw)

    out = jax.block_until_ready(fasternext_forward(x, kparams, shortcut=True))
    ref = jax.block_until_ready(ref_forward(x, raw, shortcut=True))

    assert out.shape == (B, c2, H, W), out.shape
    max_err = float(jnp.max(jnp.abs(out - ref)))
    assert jnp.allclose(out, ref, rtol=2.5e-2, atol=2.5e-2), f"max_err={max_err}"
    print("KERNEL_OK")
</pallas_src>

<mosaic_0001>
module attributes {stable_mosaic.version = 11 : i64} {
  func.func @_cv12_kernel(%arg0: i32, %arg1: i32, %arg2: memref<1x8x128xf32, #tpu.memory_space<vmem>>, %arg3: memref<8x8xbf16, #tpu.memory_space<vmem>>, %arg4: memref<8x1xf32, #tpu.memory_space<vmem>>, %arg5: memref<8x8xbf16, #tpu.memory_space<vmem>>, %arg6: memref<8x1xf32, #tpu.memory_space<vmem>>, %arg7: memref<1x8x128xbf16, #tpu.memory_space<vmem>>, %arg8: memref<1x8x128xbf16, #tpu.memory_space<vmem>>) attributes {dimension_semantics = [#tpu.dimension_semantics<parallel>, #tpu.dimension_semantics<parallel>], iteration_bounds = array<i64: 2, 2>, scalar_prefetch = 0 : i64, scratch_operands = 0 : i64, tpu.core_type = #tpu.core_type<tc>, window_params = [{transform_indices = @transform_0, window_bounds = array<i64: 1, 8, 128>}, {pipeline_mode = #tpu.pipeline_mode<synchronous>, transform_indices = @transform_1, window_bounds = array<i64: 8, 8>}, {pipeline_mode = #tpu.pipeline_mode<synchronous>, transform_indices = @transform_2, window_bounds = array<i64: 8, 1>}, {pipeline_mode = #tpu.pipeline_mode<synchronous>, transform_indices = @transform_3, window_bounds = array<i64: 8, 8>}, {pipeline_mode = #tpu.pipeline_mode<synchronous>, transform_indices = @transform_4, window_bounds = array<i64: 8, 1>}, {transform_indices = @transform_5, window_bounds = array<i64: 1, 8, 128>}, {transform_indices = @transform_6, window_bounds = array<i64: 1, 8, 128>}]} {
    %c0 = arith.constant 0 : index
    %c0_0 = arith.constant 0 : index
    %c0_1 = arith.constant 0 : index
    %0 = vector.load %arg2[%c0, %c0_0, %c0_1] : memref<1x8x128xf32, #tpu.memory_space<vmem>>, vector<1x8x128xf32>
    %1 = vector.shape_cast %0 : vector<1x8x128xf32> to vector<8x128xf32>
    %2 = arith.truncf %1 : vector<8x128xf32> to vector<8x128xbf16>
    %c0_2 = arith.constant 0 : index
    %c0_3 = arith.constant 0 : index
    %3 = vector.load %arg3[%c0_2, %c0_3] : memref<8x8xbf16, #tpu.memory_space<vmem>>, vector<8x8xbf16>
    %cst = arith.constant dense<0.000000e+00> : vector<8x128xf32>
    %4 = tpu.matmul %3, %2, %cst {dimension_numbers = #tpu.dot_dimension_numbers<[1], [0], [0], [1], [0, 0, 1, 1], [], []>} : vector<8x8xbf16>, vector<8x128xbf16>, vector<8x128xf32> -> vector<8x128xf32>
    %c0_4 = arith.constant 0 : index
    %c0_5 = arith.constant 0 : index
    %5 = vector.load %arg4[%c0_4, %c0_5] : memref<8x1xf32, #tpu.memory_space<vmem>>, vector<8x1xf32>
    %6 = vector.broadcast %5 : vector<8x1xf32> to vector<8x128xf32>
    %7 = arith.addf %4, %6 : vector<8x128xf32>
    %cst_6 = arith.constant 0.000000e+00 : f32
    %8 = vector.broadcast %cst_6 : f32 to vector<8x128xf32>
    %9 = arith.subf %8, %7 : vector<8x128xf32>
    %10 = math.exp %9 : vector<8x128xf32>
    %cst_7 = arith.constant 1.000000e+00 : f32
    %11 = vector.broadcast %cst_7 : f32 to vector<8x128xf32>
    %12 = arith.addf %11, %10 : vector<8x128xf32>
    %13 = tpu.reciprocal %12 {approx = true} : vector<8x128xf32> -> vector<8x128xf32>
    %14 = arith.mulf %7, %13 : vector<8x128xf32>
    %15 = arith.truncf %14 : vector<8x128xf32> to vector<8x128xbf16>
    %c0_8 = arith.constant 0 : index
    %c0_9 = arith.constant 0 : index
    %c0_10 = arith.constant 0 : index
    %16 = vector.load %arg7[%c0_8, %c0_9, %c0_10] : memref<1x8x128xbf16, #tpu.memory_space<vmem>>, vector<1x8x128xbf16>
    %17 = vector.shape_cast %16 : vector<1x8x128xbf16> to vector<8x128xbf16>
    %18 = vector.shape_cast %15 : vector<8x128xbf16> to vector<1x8x128xbf16>
    tpu.vector_store %arg7[%c0_8, %c0_9, %c0_10], %18 {strides = array<i32>} : memref<1x8x128xbf16, #tpu.memory_space<vmem>>, vector<1x8x128xbf16>,
    %c0_11 = arith.constant 0 : index
    %c0_12 = arith.constant 0 : index
    %19 = vector.load %arg5[%c0_11, %c0_12] : memref<8x8xbf16, #tpu.memory_space<vmem>>, vector<8x8xbf16>
    %cst_13 = arith.constant dense<0.000000e+00> : vector<8x128xf32>
    %20 = tpu.matmul %19, %2, %cst_13 {dimension_numbers = #tpu.dot_dimension_numbers<[1], [0], [0], [1], [0, 0, 1, 1], [], []>} : vector<8x8xbf16>, vector<8x128xbf16>, vector<8x128xf32> -> vector<8x128xf32>
    %c0_14 = arith.constant 0 : index
    %c0_15 = arith.constant 0 : index
    %21 = vector.load %arg6[%c0_14, %c0_15] : memref<8x1xf32, #tpu.memory_space<vmem>>, vector<8x1xf32>
    %22 = vector.broadcast %21 : vector<8x1xf32> to vector<8x128xf32>
    %23 = arith.addf %20, %22 : vector<8x128xf32>
    %cst_16 = arith.constant 0.000000e+00 : f32
    %24 = vector.broadcast %cst_16 : f32 to vector<8x128xf32>
    %25 = arith.subf %24, %23 : vector<8x128xf32>
    %26 = math.exp %25 : vector<8x128xf32>
    %cst_17 = arith.constant 1.000000e+00 : f32
    %27 = vector.broadcast %cst_17 : f32 to vector<8x128xf32>
    %28 = arith.addf %27, %26 : vector<8x128xf32>
    %29 = tpu.reciprocal %28 {approx = true} : vector<8x128xf32> -> vector<8x128xf32>
    %30 = arith.mulf %23, %29 : vector<8x128xf32>
    %31 = arith.truncf %30 : vector<8x128xf32> to vector<8x128xbf16>
    %c0_18 = arith.constant 0 : index
    %c0_19 = arith.constant 0 : index
    %c0_20 = arith.constant 0 : index
    %32 = vector.load %arg8[%c0_18, %c0_19, %c0_20] : memref<1x8x128xbf16, #tpu.memory_space<vmem>>, vector<1x8x128xbf16>
    %33 = vector.shape_cast %32 : vector<1x8x128xbf16> to vector<8x128xbf16>
    %34 = vector.shape_cast %31 : vector<8x128xbf16> to vector<1x8x128xbf16>
    tpu.vector_store %arg8[%c0_18, %c0_19, %c0_20], %34 {strides = array<i32>} : memref<1x8x128xbf16, #tpu.memory_space<vmem>>, vector<1x8x128xbf16>,
    return
  }
  func.func @transform_0(%arg0: i32, %arg1: i32) -> (i32, i32, i32) {
    %c0_i32 = arith.constant 0 : i32
    %c0_i32_0 = arith.constant 0 : i32
    return %arg0, %c0_i32, %arg1 : i32, i32, i32
  }
  func.func @transform_1(%arg0: i32, %arg1: i32) -> (i32, i32) {
    %c0_i32 = arith.constant 0 : i32
    %c0_i32_0 = arith.constant 0 : i32
    %c0_i32_1 = arith.constant 0 : i32
    return %c0_i32, %c0_i32_0 : i32, i32
  }
  func.func @transform_2(%arg0: i32, %arg1: i32) -> (i32, i32) {
    %c0_i32 = arith.constant 0 : i32
    %c0_i32_0 = arith.constant 0 : i32
    %c0_i32_1 = arith.constant 0 : i32
    return %c0_i32, %c0_i32_0 : i32, i32
  }
  func.func @transform_3(%arg0: i32, %arg1: i32) -> (i32, i32) {
    %c0_i32 = arith.constant 0 : i32
    %c0_i32_0 = arith.constant 0 : i32
    %c0_i32_1 = arith.constant 0 : i32
    return %c0_i32, %c0_i32_0 : i32, i32
  }
  func.func @transform_4(%arg0: i32, %arg1: i32) -> (i32, i32) {
    %c0_i32 = arith.constant 0 : i32
    %c0_i32_0 = arith.constant 0 : i32
    %c0_i32_1 = arith.constant 0 : i32
    return %c0_i32, %c0_i32_0 : i32, i32
  }
  func.func @transform_5(%arg0: i32, %arg1: i32) -> (i32, i32, i32) {
    %c0_i32 = arith.constant 0 : i32
    %c0_i32_0 = arith.constant 0 : i32
    return %arg0, %c0_i32, %arg1 : i32, i32, i32
  }
  func.func @transform_6(%arg0: i32, %arg1: i32) -> (i32, i32, i32) {
    %c0_i32 = arith.constant 0 : i32
    %c0_i32_0 = arith.constant 0 : i32
    return %arg0, %c0_i32, %arg1 : i32, i32, i32
  }
}

</mosaic_0001>

<bundles_post_ra>
// kernel: tpu_custom_call.1
= control target key start
LH: loop header
LB: loop body
LE: loop exit
PB: predicated region body
PF: predicated region fallthrough
CT: control target
= control target key end

     0   :  { %12 = vsyncpa [#allocation3], 0  ;;  %s1017_s0 = inlined_call_operand.hbm [shape: f32[2,8,256], index: 0, kind: input, shape index: {}]   ;;  %s1018_s1 = inlined_call_operand.vmem [shape: bf16[8,8], index: 1, kind: input, shape index: {}]   ;;  %s1019_s2 = inlined_call_operand.vmem [shape: f32[8,1], index: 2, kind: input, shape index: {}]   ;;  %s1020_s3 = inlined_call_operand.vmem [shape: bf16[8,8], index: 3, kind: input, shape index: {}]   ;;  %s1021_s4 = inlined_call_operand.vmem [shape: f32[8,1], index: 4, kind: input, shape index: {}]   ;;  %s1022_s5 = inlined_call_operand.hbm [shape: bf16[2,8,256], index: 5, kind: output, shape index: {0}]   ;;  %s1023_s6 = inlined_call_operand.hbm [shape: bf16[2,8,256], index: 6, kind: output, shape index: {1}]  }
   0x1   :  { %14 = vsyncpa [#allocation3 + $0x1], 0 }
   0x2   :  { %15 = vsyncpa [#allocation4], 0 }
   0x3   :  { %17 = vsyncpa [#allocation4 + $0x1], 0 }
   0x4   :  { %18 = vsyncpa [#allocation7], 0 }
   0x5   :  { %20 = vsyncpa [#allocation7 + $0x1], 0  ;;  %s841_s21 = smov 0   ;;  %s843_s22 = smov 0  }
   0x6   :  { %s845_s23 = smov 0   ;;  %s847_s24 = smov 0  }
   0x7   :  { %s849_s25 = smov 0   ;;  %s851_s26 = smov 0  }
   0x8   :  { %s853_s27 = smov 0   ;;  %s855_s28 = smov 0  }
   0x9 LB: > { %1028 = sst [smem:[#allocation11_spill]] %s775_s21  ;;  %s529_s29 = sadd.s32 4294967295, %s803_s28   ;;  %s803_s28 = sphi %s855_s28, %s26_s28   ;;  %s799_s27 = sphi %s853_s27, %s1046_s27   ;;  %s795_s26 = sphi %s851_s26, %s1045_s26   ;;  %s791_s25 = sphi %s849_s25, %s1044_s25   ;;  %s787_s24 = sphi %s847_s24, %s1043_s24   ;;  %s783_s23 = sphi %s845_s23, %s1042_s23   ;;  %s779_s22 = sphi %s843_s22, %s1041_s22   ;;  %s775_s21 = sphi %s841_s21, %s1040_s21  }
   0xa   : > { %s530_s30 = sadd.s32 4294967294, %s803_s28   ;;  %s35_s7 = sadd.s32 1, %s795_s26 }
   0xb   : > { %s38_s8 = sadd.s32 1, %s799_s27  ;;  %p36_p0 = scmp.ge.s32.totalorder %s35_s7, 2 }
   0xc   : > { %s47_s9 = sadd.s32 1, %s783_s23  ;;  %p54_p1 = scmp.ne.s32.totalorder %s783_s23, %s779_s22 }
   0xd   : > { %p55_p2 = scmp.eq.s32.totalorder %s803_s28, 0  ;;  %s1048_s7 = smov (%p36_p0, %s35_s7), 0 }
   0xe   : > { %1029 = sst [smem:[#allocation12_spill]] %s1048_s7  ;;  %s1050_s8 = smov (!%p36_p0, %s38_s8), %s799_s27 }
   0xf   : > { %s43_s10 = ssub.s32 %s795_s26, %s1048_s7  ;;  %p894_p3 = por %p55_p2, %p54_p1 }
  0x10   : > { %p40_p4 = scmp.ge.s32.totalorder %s1050_s8, 2  ;;  %p60_p5 = scmp.ne.s32.totalorder %s779_s22, %s775_s21 }
  0x11   : > { %p61_p6 = scmp.eq.s32.totalorder %s529_s29, 0  ;;  %p170_p7 = scmp.eq.s32.totalorder %s529_s29, 3 }
  0x12   : > { %s1052_s8 = smov (%p40_p4, %s1050_s8), 0  ;;  %p176_p10 = scmp.eq.s32.totalorder %s530_s30, 3 }
  0x13   : > { %1031 = sst [smem:[#allocation13_spill]] %s1052_s8  ;;  %p902_p8 = por %p61_p6, %p60_p5 }
  0x14   : > { %p906_p9 = por %p170_p7, %p54_p1  ;;  %s42_s14 = ssub.s32 %s799_s27, %s1052_s8 }
  0x15   : > { %s44_s15 = sor.u32 %s43_s10, %s42_s14  ;;  %p912_p12 = por %p176_p10, %p60_p5 }
  0x16   : > { %p45_p11 = scmp.eq.s32.totalorder %s44_s15, 0  ;;  %p567_p13 = scmp.lt.s32.totalorder %s803_s28, 4 }
  0x17   : > { %s1034_s16 = scalar_select %p912_p12, 1, 0 }
  0x18   : > { %s236_s17 = sand.u32 1, %s783_s23   ;;  %s534_s20 = sshll.u32 %s799_s27, 1 }
  0x19   : > { %1035 = sst [smem:[#allocation14_spill]] %s1034_s16  ;;  %s533_s19 = sshll.u32 %s236_s17, 3 }
  0x1a   : > { %s919_s18 = scalar_select %p45_p11, %s783_s23, %s47_s9  }
  0x1b   : > { %s244_s29 = sadd.s32 %s795_s26, %s534_s20  ;;  %s240_s7 = scalar_lea.vmem [#allocation2], %s533_s19 }
  0x1c   : > { %s250_s21 = sshll.u32 %s240_s7, 4  ;;  %s535_s8 = sshll.u32 %s244_s29, 3  ;;  %s251_s21 = int_to_ptr.vmem [resolvable:$true] %s250_s21 }
  0x1d   : > { %s246_s14 = scalar_lea.hbm %s1017_s0, %s535_s8  ;;  %p557_p0 = pnand %p567_p13, %p894_p3 }
  0x1e   : > { %s248_s15 = sshll.u32 %s246_s14, 4  ;;  %p536_p1 = scmp.ge.s32.totalorder %s803_s28, 1  ;;  %s249_s15 = int_to_ptr.hbm [resolvable:$true] %s248_s15 }
  0x1f   : > { %s237_s16 = scalar_lea.sflag [#allocation3], %s236_s17  ;;  %p255_p2 = scmp.lt.s32.totalorder %s803_s28, 5 }
  0x20   : > { %559 = dma.hbm_to_vmem [thread:$0]  (!%p557_p0), %s249_s15, 128, %s251_s21, %s237_s16  }
  0x21   : > { %p256_p4 = pnand %p536_p1, %p255_p2 }
  0x22   : > { %s931_s9 = sand.u32 (!%p256_p4), 1, %s779_s22  }
  0x23   : > { %259 = sbr.rel (%p256_p4) target bundleno = 216 (0xd8), region = 40  ;;  %s537_s7 = sshll.u32 (!%p256_p4), %s931_s9, 3 }
  0x24   : > { %s262_s19 = scalar_lea.sflag (!%p256_p4), [#allocation3], %s931_s9  ;;  %s265_s20 = scalar_lea.vmem (!%p256_p4), [#allocation2], %s537_s7 }
  0x28   : > { %762 = dma.done.wait (%p902_p8), %s262_s19, 128  }
  0x29   : > { %764 = vsyncadd (%p902_p8), %s262_s19, 4294967168  ;;  %v805_v0 = vmov 0   ;;  %v304_v1 = vld [vmem:[%s1019_s2] sm:$0xff]  ;;  %vm314_vm0 = vcmask 1043456   ;;  %vm310_vm1 = vcmask 64512   ;;  %s544_s10 = sshll.u32 %s791_s25, 1 }
  0x2a   : > { %634 = vset.pattern.permute.xlu0 %v805_v0  ;;  %v301_v2 = vld [vmem:[%s265_s20] sm:$0xff]  ;;  %s386_s14 = sadd.s32 %s787_s24, %s544_s10  ;;  %s538_s15 = sshll.u32 %s931_s9, 2 }
  0x2b   : > { %307 = vperm.xlu0 %634, %v304_v1   ;;  %v302_v3 = vpack.c.bf16 %v301_v2, %v301_v2  ;;  %v303_v5 = vld [vmem:[%s1018_s1] sm:$0xf]  ;;  %s545_s7 = sshll.u32 %s386_s14, 2  ;;  %s292_s12 = scalar_lea.vmem [#allocation5], %s538_s15 }
  0x2c   : > { %v339_v6 = vld [vmem:[%s1020_s3] sm:$0xf]  ;;  %s388_s21 = scalar_lea.hbm %s1022_s5, %s545_s7  ;;  %s404_s16 = scalar_lea.hbm %s1023_s6, %s545_s7 }
  0x2d   : > { %v316_v4 = vsel %vm314_vm0, %v302_v3, 0  ;;  %v340_v7 = vld [vmem:[%s1021_s4] sm:$0xff]  ;;  %s390_s17 = sshll.u32 %s292_s12, 4  ;;  %s392_s24 = sshll.u32 %s388_s21, 4  ;;  %s391_s17 = int_to_ptr.vmem [resolvable:$true] %s390_s17  ;;  %s393_s24 = int_to_ptr.hbm [resolvable:$true] %s392_s24 }
  0x2e   : > { %325 = vmatpush.bf16.msra.mxu0 %v316_v4  ;;  %356 = vmatpush.bf16.msra.mxu1 %v316_v4  ;;  %s299_s25 = scalar_lea.vmem [#allocation6], %s538_s15  ;;  %s408_s30 = sshll.u32 %s404_s16, 4  ;;  %s962_s30 = int_to_ptr.hbm [resolvable:$true] %s408_s30 }
  0x2f   : > { %s406_s29 = sshll.u32 %s299_s25, 4  ;;  %s371_s10 = scalar_lea.sflag [#allocation4], %s931_s9  ;;  %s960_s29 = int_to_ptr.vmem [resolvable:$true] %s406_s29 }
  0x30   : > { %s687_s14 = sshra.s32 %s393_s24, 4  ;;  %s693_s20 = scalar_lea.hbm %s1022_s5, 16  ;;  %s688_s14 = int_to_ptr.hbm [resolvable:$true] %s687_s14 }
  0x31   : > { %540 = vmatmul.msk.bf16.vlgmr.msra.gmra.mxu0 %vm310_vm1, %v303_v5  ;;  %541 = vmatmul.msk.bf16.vlgmr.msra.gmra.mxu1 %vm310_vm1, %v339_v6  ;;  %s689_s7 = scalar_lea.hbm %s688_s14, 4  ;;  %p694_p7 = scmp.lt.s32.totalorder %s688_s14, %s1022_s5 }
  0x32   : > { %p690_p3 = scmp.ne.s32.totalorder %s688_s14, %s689_s7  ;;  %p695_p8 = scmp.lt.s32.totalorder %s693_s20, %s689_s7 }
  0x33   : > { %343 = vperm.xlu0 %634, %v340_v7  }
  0x34   : > { %p691_p5 = pnand %p690_p3, %p906_p9  ;;  %p696_p10 = por %p695_p8, %p694_p7 }
  0x36   : > { %p692_p6 = pneg %p691_p5 }
  0x38   : > { %p697_p11 = pnand %p696_p10, %p692_p6 }
  0x9d   : > { %v308_v8 = vpop.permute.xlu0 %307 }
  0xa5   : > { %v344_v9 = vpop.permute.xlu0 %343 }
  0xae   : > { %v327_v10 = vpop.f32.mrf.mxu0  ;;  %v358_v11 = vpop.f32.mrf.mxu1 }
  0xaf   : > { %v328_v12 = vadd.f32 %v327_v10, %v308_v8  ;;  %v359_v13 = vadd.f32 %v358_v11, %v344_v9 }
  0xb1   : > { %v331_v14 = vsub.f32 0.0, %v328_v12  ;;  %v362_v15 = vsub.f32 0.0, %v359_v13 }
  0xb3   : > { %v332_v16 = vmul.f32 1.442695, %v331_v14  ;;  %v363_v17 = vmul.f32 1.442695, %v362_v15 }
  0xb5   : > { %635 = vpow2.f32 %v332_v16 }
  0xb6   : > { %637 = vpow2.f32 %v363_v17  ;;  %v329_v18 = vpop.f32.mrf.mxu0  ;;  %v360_v19 = vpop.f32.mrf.mxu1 }
  0xbb   : > { %v636_v20 = vpop.eup %635 }
  0xbc   : > { %v638_v21 = vpop.eup %637  ;;  %v334_v22 = vadd.f32 1.0, %v636_v20 }
  0xbd   : > { %v365_v23 = vadd.f32 1.0, %v638_v21 }
  0xbe   : > { %639 = vrcp.f32 %v334_v22 }
  0xbf   : > { %641 = vrcp.f32 %v365_v23 }
  0xc4   : > { %v640_v24 = vpop.eup %639 }
  0xc5   : > { %v642_v25 = vpop.eup %641  ;;  %v336_v26 = vmul.f32 %v640_v24, %v328_v12 }
  0xc6   : > { %v367_v27 = vmul.f32 %v642_v25, %v359_v13 }
  0xc7   : > { %v337_v28 = vpack.c.bf16 %v336_v26, %v336_v26 }
  0xc8   : > { %v368_v29 = vpack.c.bf16 %v367_v27, %v367_v27 }
  0xc9   : > { %338 = vst [vmem:[%s292_s12] sm:$0xf] %v337_v28 }
  0xca   : > { %700 = shalt.err (!%p697_p11)
}
  0xcb   : > { %552 = dma.vmem_to_hbm [thread:$0]  (%p906_p9), %s391_s17, 64, %s393_s24, %s371_s10   ;;  %369 = vst [vmem:[%s299_s25] sm:$0xf] %v368_v29 }
  0xcc   : > { %s376_s11 = scalar_lea.sflag [#allocation7], %s931_s9  ;;  %s715_s16 = sshra.s32 %s962_s30, 4  ;;  %s716_s16 = int_to_ptr.hbm [resolvable:$true] %s715_s16 }
  0xcd   : > { %s717_s12 = scalar_lea.hbm %s716_s16, 4  ;;  %s721_s15 = scalar_lea.hbm %s1023_s6, 16 }
  0xce   : > { %p718_p13 = scmp.ne.s32.totalorder %s716_s16, %s717_s12  ;;  %p722_p2 = scmp.lt.s32.totalorder %s716_s16, %s1023_s6 }
  0xcf   : > { %p723_p4 = scmp.lt.s32.totalorder %s721_s15, %s717_s12 }
  0xd0   : > { %p719_p0 = pnand %p718_p13, %p906_p9 }
  0xd1   : > { %p724_p3 = por %p723_p4, %p722_p2 }
  0xd2   : > { %p720_p1 = pneg %p719_p0 }
  0xd4   : > { %p725_p5 = pnand %p724_p3, %p720_p1 }
  0xd6   : > { %728 = shalt.err (!%p725_p5)
}
  0xd7   : > { %553 = dma.vmem_to_hbm [thread:$0]  (%p906_p9), %s960_s29, 64, %s962_s30, %s376_s11  }
  0xd8 PF: > { %s1036_s9 = sld [smem:[#allocation11_spill]]  ;;  %p568_p6 = scmp.ge.s32.totalorder %s803_s28, 2 }
  0xda   : > { %p561_p7 = pnand %p568_p6, %p912_p12 }
  0xdc   : > { %p562_p8 = pneg %p561_p7 }
  0xde   : > { %s420_s24 = sand.u32 1, %s1036_s9  }
  0xdf   : > { %s421_s25 = scalar_lea.sflag [#allocation4], %s420_s24 }
  0xe0   : > { %766 = dma.done.wait (%p562_p8), %s421_s25, 64  }
  0xe1   : > { %768 = vsyncadd (%p562_p8), %s421_s25, 4294967232  ;;  %s431_s10 = scalar_lea.sflag [#allocation7], %s420_s24 }
  0xe2   : > { %770 = dma.done.wait (%p562_p8), %s431_s10, 64  }
  0xe3   : > { %772 = vsyncadd (%p562_p8), %s431_s10, 4294967232  ;;  %s26_s28 = sadd.s32 1, %s803_s28   ;;  %s1038_s13 = sld [smem:[#allocation12_spill]] }
  0xe4   : > { %p23_p10 = scmp.ge.s32.totalorder %s26_s28, 6   ;;  %s1039_s29 = sld [smem:[#allocation13_spill]] }
  0xe5   : > { %s1040_s21 = smov %s779_s22  ;;  %s1041_s22 = smov %s783_s23 }
  0xe6   : > { %s1042_s23 = smov %s919_s18  ;;  %s1043_s24 = smov %s795_s26 }
  0xe7   : > { %s1044_s25 = smov %s799_s27  ;;  %25 = sbr.rel (!%p23_p10) target bundleno = 9 (0x9), region = 102 }
  0xe9   : > { %s1045_s26 = smov %s1038_s13 }
  0xea   : > { %s1046_s27 = smov %s1039_s29 }
  0xec   :  { %437 = vsyncpa [#allocation3], 1 }
  0xed   :  { %439 = vsyncpa [#allocation3 + $0x1], 1 }
  0xee   :  { %440 = vsyncpa [#allocation4], 1 }
  0xef   :  { %442 = vsyncpa [#allocation4 + $0x1], 1 }
  0xf0   :  { %443 = vsyncpa [#allocation7], 1 }
  0xf1   :  { %445 = vsyncpa [#allocation7 + $0x1], 1 }

</bundles_post_ra>
